<compile_context>
chip_gen: v6e
topology: v6e:2x2x1
jax: 0.10.0
libtpu: 0.0.40
codegen_flags: <defaults>
</compile_context>

<pallas_src>
import jax
import jax.numpy as jnp
from jax.experimental import pallas as pl
from jax.experimental.pallas import tpu as pltpu

_LANE = 128
_DEFAULT_TILE_B = 1024   # mem-bound tile sweet spot; 9*1024*4B per input block


def _round_up(n: int, m: int) -> int:
    return ((n + m - 1) // m) * m


# ---------------------------------------------------------------------------
# Pallas kernel: lane-dense fused multiply -> sublane reduce -> sigmoid.
#   xT_ref: (F, TB) float32  — features on sublanes, batch on lanes
#   wT_ref: (F, 1)  float32  — weight column, broadcast over lanes (VPU)
#   o_ref : (1, TB) float32  — lane-dense output (unmasked stores)
# ---------------------------------------------------------------------------
def _laplace_kernel(xT_ref, wT_ref, o_ref):
    prod = xT_ref[...] * wT_ref[...]                  # VPU, broadcast over lanes
    logits = jnp.sum(prod, axis=0, keepdims=True)     # XLU sublane reduce over F rows
    o_ref[...] = jax.nn.sigmoid(logits).astype(o_ref.dtype)   # EUP


def laplace_forward_pallas(x: jax.Array, w: jax.Array,
                           *, tile_b: int = _DEFAULT_TILE_B) -> jax.Array:
    """sigmoid(x @ w.T) with batch on the lane axis, tiled over batch.

    x: (B, F) float32,  w: (1, F) float32  ->  (B, 1) float32
    """
    x = jnp.asarray(x, jnp.float32)
    w = jnp.asarray(w, jnp.float32)
    B, F = x.shape
    assert w.shape == (1, F), f"expected weight (1, {F}), got {w.shape}"

    tb = _round_up(min(tile_b, _round_up(B, _LANE)), _LANE)
    B_pad = _round_up(B, tb)

    # Lane-dense layout: pad the batch axis, then transpose to (F, B_pad).
    # Padded lanes produce garbage-free logits (zeros -> sigmoid(0)=0.5) that
    # are sliced off below.
    x_pad = jnp.pad(x, ((0, B_pad - B), (0, 0)))
    xT = x_pad.T                       # (F, B_pad)
    wT = w.T                           # (F, 1) — transpose in wrapper, not kernel

    out = pl.pallas_call(
        _laplace_kernel,
        out_shape=jax.ShapeDtypeStruct((1, B_pad), jnp.float32),
        grid_spec=pltpu.PrefetchScalarGridSpec(
            num_scalar_prefetch=0,
            grid=(B_pad // tb,),
            in_specs=[
                pl.BlockSpec((F, tb), lambda i: (0, i)),   # batch tile on lanes
                pl.BlockSpec((F, 1), lambda i: (0, 0)),    # weight column, reused
            ],
            out_specs=pl.BlockSpec((1, tb), lambda i: (0, i)),
        ),
        compiler_params=pltpu.CompilerParams(
            dimension_semantics=("parallel",),   # megacore-shardable batch tiles
        ),
    )(xT, wT)

    return out[0, :B].reshape(B, 1)


class LaplaceApproximationClassifier:
    """JAX/Pallas port of the PyTorch module (forward pass only)."""

    def __init__(self, n_features_selected: int = 6):
        self.n_features_selected = n_features_selected
        # Deterministic weight, exactly as assigned in the PyTorch __init__ (1 x 9).
        self.theta_weight = jnp.array(
            [[1.1164, -0.3639, 0.1513, -0.3514, -0.7906,
              -0.0915, 0.2352, 2.244, 0.5817]],
            dtype=jnp.float32,
        )
        # Prior / posterior buffers: unused in forward, kept for parity only.
        self.prior_mean = jnp.zeros((n_features_selected + 1,), jnp.float32)
        self.prior_sigma = 0.5 * jnp.eye(n_features_selected + 1, dtype=jnp.float32)
        self.posterior_sigma = jnp.eye(n_features_selected + 1, dtype=jnp.float32)

    def __call__(self, x: jax.Array) -> jax.Array:
        # Note: for production use with tiny batches (B ~ 8) a plain fused
        # sigmoid(x @ w.T) under XLA beats the pallas_call dispatch cost; here
        # we always take the Pallas path so the kernel is what gets exercised.
        return laplace_forward_pallas(x, self.theta_weight)


if __name__ == "__main__":
    model = LaplaceApproximationClassifier(n_features_selected=6)
    F = model.theta_weight.shape[1]  # 9, per the weight override in __init__

    # Small, deterministic batch consistent with the module's use case.
    B = 8
    x = jax.random.normal(jax.random.PRNGKey(0), (B, F), dtype=jnp.float32)

    out = model(x)                       # Pallas kernel path
    out = jax.block_until_ready(out)

    ref = jax.nn.sigmoid(x @ model.theta_weight.T)
    assert out.shape == (B, 1), out.shape
    assert jnp.allclose(out, ref, atol=1e-6, rtol=1e-6), "mismatch vs reference"

    print("KERNEL_OK")
</pallas_src>

<mosaic_0001>
module attributes {stable_mosaic.version = 11 : i64} {
  func.func @_laplace_kernel(%arg0: i32, %arg1: memref<9x128xf32, #tpu.memory_space<vmem>>, %arg2: memref<9x1xf32, #tpu.memory_space<vmem>>, %arg3: memref<1x128xf32, #tpu.memory_space<vmem>>) attributes {dimension_semantics = [#tpu.dimension_semantics<parallel>], iteration_bounds = array<i64: 1>, scalar_prefetch = 0 : i64, scratch_operands = 0 : i64, tpu.core_type = #tpu.core_type<tc>, window_params = [{transform_indices = @transform_0, window_bounds = array<i64: 9, 128>}, {pipeline_mode = #tpu.pipeline_mode<synchronous>, transform_indices = @transform_1, window_bounds = array<i64: 9, 1>}, {transform_indices = @transform_2, window_bounds = array<i64: 1, 128>}]} {
    %c0 = arith.constant 0 : index
    %c0_0 = arith.constant 0 : index
    %0 = vector.load %arg1[%c0, %c0_0] : memref<9x128xf32, #tpu.memory_space<vmem>>, vector<9x128xf32>
    %c0_1 = arith.constant 0 : index
    %c0_2 = arith.constant 0 : index
    %1 = vector.load %arg2[%c0_1, %c0_2] : memref<9x1xf32, #tpu.memory_space<vmem>>, vector<9x1xf32>
    %2 = vector.broadcast %1 : vector<9x1xf32> to vector<9x128xf32>
    %3 = arith.mulf %0, %2 : vector<9x128xf32>
    %cst = arith.constant dense<0.000000e+00> : vector<128xf32>
    %4 = vector.multi_reduction <add>, %3, %cst [0] : vector<9x128xf32> to vector<128xf32>
    %5 = vector.shape_cast %4 : vector<128xf32> to vector<1x128xf32>
    %6 = arith.negf %5 : vector<1x128xf32>
    %7 = math.exp %6 : vector<1x128xf32>
    %cst_3 = arith.constant 1.000000e+00 : f32
    %8 = vector.broadcast %cst_3 : f32 to vector<1x128xf32>
    %9 = arith.addf %8, %7 : vector<1x128xf32>
    %10 = arith.divf %8, %9 : vector<1x128xf32>
    %c0_4 = arith.constant 0 : index
    %c0_5 = arith.constant 0 : index
    %11 = vector.load %arg3[%c0_4, %c0_5] : memref<1x128xf32, #tpu.memory_space<vmem>>, vector<1x128xf32>
    tpu.vector_store %arg3[%c0_4, %c0_5], %10 {strides = array<i32>} : memref<1x128xf32, #tpu.memory_space<vmem>>, vector<1x128xf32>,
    return
  }
  func.func @transform_0(%arg0: i32) -> (i32, i32) {
    %c0_i32 = arith.constant 0 : i32
    %c0_i32_0 = arith.constant 0 : i32
    return %c0_i32, %arg0 : i32, i32
  }
  func.func @transform_1(%arg0: i32) -> (i32, i32) {
    %c0_i32 = arith.constant 0 : i32
    %c0_i32_0 = arith.constant 0 : i32
    %c0_i32_1 = arith.constant 0 : i32
    return %c0_i32, %c0_i32_0 : i32, i32
  }
  func.func @transform_2(%arg0: i32) -> (i32, i32) {
    %c0_i32 = arith.constant 0 : i32
    %c0_i32_0 = arith.constant 0 : i32
    return %c0_i32, %arg0 : i32, i32
  }
}

</mosaic_0001>

<bundles_post_ra>
// kernel: tpu_custom_call.1
= control target key start
LH: loop header
LB: loop body
LE: loop exit
PB: predicated region body
PF: predicated region fallthrough
CT: control target
= control target key end

     0   :  { %v88_v1 = vmov 0   ;;  %s120_s0 = inlined_call_operand.vmem [shape: f32[9,128], index: 0, kind: input, shape index: {}]   ;;  %s121_s1 = inlined_call_operand.vmem [shape: f32[9,1], index: 1, kind: input, shape index: {}]   ;;  %s122_s2 = inlined_call_operand.hbm [shape: f32[1,128], index: 2, kind: output, shape index: {}]  }
   0x1   :  { %v15_v0 = vld [vmem:[%s121_s1 + $0x8] sm:$0x1]  ;;  %61 = vset.pattern.permute.xlu0 %v88_v1 }
   0x2   :  { %7 = vsyncpa [#allocation3], 0  ;;  %23 = vperm.xlu0 %61, %v15_v0   ;;  %v14_v2 = vld [vmem:[%s121_s1] sm:$0xff]  ;;  %v13_v3 = vld [vmem:[%s120_s0 + $0x8] sm:$0x1]  ;;  %vm28_vm0 = vcmask 1040384  }
   0x3   :  { %v12_v6 = vld [vmem:[%s120_s0] sm:$0xff]  ;;  %s89_s1 = smov [#allocation2]  }
   0x4   :  { %s50_s17 = sshll.u32 %s89_s1, 4  ;;  %s51_s17 = int_to_ptr.vmem [resolvable:$true] %s50_s17 }
   0x5   :  { %s66_s0 = scalar_lea.vmem %s51_s17, 16  ;;  %s70_s18 = scalar_lea.vmem %s51_s17, 32 }
   0x6   :  { %18 = vperm.xlu0 %61, %v14_v2   ;;  %p67_p0 = scmp.ne.s32.totalorder %s51_s17, %s66_s0  ;;  %p71_p1 = scmp.lt.s32.totalorder %s51_s17, %s51_s17 }
   0x7   :  { %p72_p2 = scmp.lt.s32.totalorder %s70_s18, %s66_s0 }
   0x9   :  { %p73_p3 = por %p72_p2, %p71_p1 }
   0xb   :  { %p74_p4 = pnand %p73_p3, %p67_p0 }
  0x7d   :  { %v24_v4 = vpop.permute.xlu0 %23 }
  0x7e   :  { %v27_v5 = vmul.f32 %v24_v4, %v13_v3 }
  0x80   :  { %v29_v9 = vsel %vm28_vm0, %v27_v5, 0.0 }
  0x81   :  { %v19_v7 = vpop.permute.xlu0 %18 }
  0x82   :  { %v26_v8 = vmul.f32 %v19_v7, %v12_v6 }
  0x84   :  { %v30_v10 = vadd.f32 %v29_v9, %v26_v8 }
  0x86   :  { %v31_v11 = vrot.slane %v30_v10, 4 }
  0x88   :  { %v32_v12 = vadd.f32 %v31_v11, %v30_v10 }
  0x8a   :  { %v33_v13 = vrot.slane %v32_v12, 2 }
  0x8c   :  { %v34_v14 = vadd.f32 %v33_v13, %v32_v12 }
  0x8e   :  { %v35_v15 = vrot.slane %v34_v14, 1 }
  0x90   :  { %v36_v16 = vadd.f32 %v35_v15, %v34_v14 }
  0x92   :  { %v58_v17 = vmul.f32 -1.442695, %v36_v16 }
  0x94   :  { %62 = vpow2.f32 %v58_v17 }
  0xa1   :  { %v63_v18 = vpop.eup %62 }
  0xa2   :  { %v40_v19 = vadd.f32 1.0, %v63_v18 }
  0xa4   :  { %64 = vrcp.f32 %v40_v19 }
  0xb1   :  { %v65_v20 = vpop.eup %64 }
  0xb2   :  { %43 = vst [vmem:[#allocation2] sm:$0x1] %v65_v20 }
  0xb3   :  { %77 = shalt.err (!%p74_p4)
}
  0xb4   :  { %53 = dma.vmem_to_hbm [thread:$0]  %s51_s17, 16, %s122_s2, [#allocation3]  }
  0xb5   :  { %86 = dma.done.wait [#allocation3], 16  }
  0xb6   :  { %87 = vsyncadd [#allocation3], 4294967280 }
  0xb7   :  { %57 = vsyncpa [#allocation3], 1 }

</bundles_post_ra>
